<compile_context>
chip_gen: v7x
topology: tpu7x:2x2x1
jax: 0.10.0
libtpu: 0.0.40
codegen_flags: <defaults>
</compile_context>

<pallas_src>
import functools

import jax
import jax.numpy as jnp
from jax.experimental import pallas as pl
from jax.experimental.pallas import tpu as pltpu


def _la_unigin_kernel(x_ref, ht_ref, h_ref, deinv_ref, w1_ref, b1_ref,
                      w2_ref, b2_ref, o_ref, *, eps):
    f32 = jnp.float32
    bf16 = jnp.bfloat16

    X = x_ref[...]                      # (N, K*Cin)  f32  (exact residual term)
    Xb = X.astype(bf16)                 # bf16 copy for the MXU
    Ht = ht_ref[...]                    # (E, N)      bf16 (pre-transposed incidence)
    H = h_ref[...]                      # (N, E)      bf16
    de_inv = deinv_ref[...]             # (E, 1)      f32  (1 / |e|, exact f32)
    scale = 1.0 + eps

    # ----- layer 1: shared UniGINConv applied to every view at once ---------
    # v2e mean over all views: Y1 = diag(1/d_e) @ H^T @ X
    Y1 = jnp.dot(Ht, Xb, preferred_element_type=f32) * de_inv          # (E, K*Cin)
    # e2v sum + GIN residual: M1 = (1+eps) X + H @ Y1
    M1 = scale * X + jnp.dot(H, Y1.astype(bf16),
                             preferred_element_type=f32)               # (N, K*Cin)
    # theta1 for all views in one matmul (block-diagonal W1), then ReLU.
    # Dropout is identity at eval; use_bn=False.
    Z = jnp.dot(M1.astype(bf16), w1_ref[...],
                preferred_element_type=f32) + b1_ref[...]              # (N, K*hid)
    Z = jnp.maximum(Z, 0.0)

    # ----- layer 2 (is_last=True: no activation / bn / dropout) -------------
    Zb = Z.astype(bf16)
    Y2 = jnp.dot(Ht, Zb, preferred_element_type=f32) * de_inv          # (E, K*hid)
    M2 = scale * Z + jnp.dot(H, Y2.astype(bf16),
                             preferred_element_type=f32)               # (N, K*hid)
    out = jnp.dot(M2.astype(bf16), w2_ref[...],
                  preferred_element_type=f32) + b2_ref[...]            # (N, Cpad)
    o_ref[...] = out                                                   # lane-dense store


def la_unigin_forward(x_list, H, params, *, eps=0.0):
    """Eval-mode forward of LAUniGIN.

    x_list: list of (N, Cin) arrays; H: (N, E) 0/1 incidence matrix.
    params: {"W1": (Cin, hid), "b1": (hid,), "W2": (K*hid, ncls), "b2": (ncls,)}
    """
    K = len(x_list)
    N, Cin = x_list[0].shape
    E = H.shape[1]
    hid = params["W1"].shape[1]
    ncls = params["W2"].shape[1]
    cpad = 128 * pl.cdiv(max(ncls, 1), 128)          # lane-dense output width

    # --- hypergraph-dependent preprocessing, done once in JAX ----------------
    Hf = H.astype(jnp.float32)
    Hb = Hf.astype(jnp.bfloat16)                     # (N, E)  0/1 exact in bf16
    Htb = Hf.T.astype(jnp.bfloat16)                  # (E, N)  pre-transposed
    d_e = jnp.sum(Hf, axis=0)[:, None]               # (E, 1)  edge degrees
    de_inv = 1.0 / jnp.maximum(d_e, 1.0)             # exact f32, multiplied in-kernel

    # --- parameter packing ----------------------------------------------------
    xcat = jnp.concatenate([x.astype(jnp.float32) for x in x_list], axis=-1)
    W1_bd = jnp.kron(jnp.eye(K, dtype=jnp.float32),
                     params["W1"].astype(jnp.float32)).astype(jnp.bfloat16)
    b1_t = jnp.tile(params["b1"].astype(jnp.float32), K).reshape(1, K * hid)
    W2p = (jnp.zeros((K * hid, cpad), jnp.float32)
           .at[:, :ncls].set(params["W2"].astype(jnp.float32))
           .astype(jnp.bfloat16))
    b2p = jnp.zeros((1, cpad), jnp.float32).at[0, :ncls].set(
        params["b2"].astype(jnp.float32))

    flops = 2 * (E * N * (K * Cin) + N * E * (K * Cin) + N * (K * Cin) * (K * hid)
                 + E * N * (K * hid) + N * E * (K * hid) + N * (K * hid) * cpad)
    bytes_accessed = int(xcat.size * 4 + Htb.size * 2 + Hb.size * 2
                         + de_inv.size * 4 + W1_bd.size * 2 + b1_t.size * 4
                         + W2p.size * 2 + b2p.size * 4 + N * cpad * 4)

    vspec = pl.BlockSpec(memory_space=pltpu.MemorySpace.VMEM)
    out = pl.pallas_call(
        functools.partial(_la_unigin_kernel, eps=float(eps)),
        out_shape=jax.ShapeDtypeStruct((N, cpad), jnp.float32),
        in_specs=[vspec] * 8,
        out_specs=vspec,
        cost_estimate=pl.CostEstimate(flops=int(flops), transcendentals=0,
                                      bytes_accessed=bytes_accessed),
        compiler_params=pltpu.CompilerParams(vmem_limit_bytes=32 * 1024 * 1024),
    )(xcat, Htb, Hb, de_inv, W1_bd, b1_t, W2p, b2p)
    return out[:, :ncls]


def _la_unigin_reference(x_list, H, params, *, eps=0.0):
    """Pure-JAX f32 reference of the same eval-mode forward."""
    Hf = H.astype(jnp.float32)
    de = jnp.maximum(jnp.sum(Hf, axis=0), 1.0)[:, None]

    def conv(X, W, b, is_last):
        Y = (Hf.T @ X) / de
        M = (1.0 + eps) * X + Hf @ Y
        out = M @ W + b
        return out if is_last else jnp.maximum(out, 0.0)

    hidden = [conv(x.astype(jnp.float32), params["W1"], params["b1"], False)
              for x in x_list]
    z = jnp.concatenate(hidden, axis=-1)
    return conv(z, params["W2"], params["b2"], True)


def _init_linear(key, fan_in, fan_out):
    """Deterministic PyTorch-Linear-like init: U(-1/sqrt(fan_in), 1/sqrt(fan_in))."""
    kw, kb = jax.random.split(key)
    bound = 1.0 / jnp.sqrt(jnp.float32(fan_in))
    W = jax.random.uniform(kw, (fan_in, fan_out), jnp.float32, -bound, bound)
    b = jax.random.uniform(kb, (fan_out,), jnp.float32, -bound, bound)
    return W, b


def init_la_unigin_params(key, concat, in_channels, hid_channels, num_classes):
    k1, k2 = jax.random.split(key)
    W1, b1 = _init_linear(k1, in_channels, hid_channels)            # shared unigin1
    W2, b2 = _init_linear(k2, concat * hid_channels, num_classes)   # unigin2 (is_last)
    return {"W1": W1, "b1": b1, "W2": W2, "b2": b2}


if __name__ == "__main__":
    key = jax.random.PRNGKey(0)

    # Small shapes consistent with the module's forward.
    N_VERTS = 16          # hypergraph vertices
    N_EDGES = 8           # hyperedges
    IN_CH = 32            # in_channels
    HID_CH = 8            # hid_channels
    NUM_CLASSES = 4
    CONCAT = 2            # len(x_list)
    EPS = 0.0             # UniGINConv default

    k_feat, k_inc, k_par = jax.random.split(key, 3)

    feat_keys = jax.random.split(k_feat, CONCAT)
    x_list = [jax.random.normal(fk, (N_VERTS, IN_CH), jnp.float32)
              for fk in feat_keys]

    # Deterministic 0/1 incidence matrix: every vertex in >=1 edge and every
    # edge has >=1 vertex.
    rand_inc = (jax.random.uniform(k_inc, (N_VERTS, N_EDGES)) < 0.3)
    base_inc = ((jnp.arange(N_VERTS)[:, None] % N_EDGES)
                == jnp.arange(N_EDGES)[None, :])
    H = (rand_inc | base_inc).astype(jnp.float32)

    params = init_la_unigin_params(k_par, CONCAT, IN_CH, HID_CH, NUM_CLASSES)

    out = la_unigin_forward(x_list, H, params, eps=EPS)
    out = jax.block_until_ready(out)
    assert out.shape == (N_VERTS, NUM_CLASSES), out.shape
    assert bool(jnp.all(jnp.isfinite(out)))

    ref = _la_unigin_reference(x_list, H, params, eps=EPS)
    assert bool(jnp.allclose(out, ref, rtol=5e-2, atol=2e-1)), (
        float(jnp.max(jnp.abs(out - ref))))

    print("KERNEL_OK")
</pallas_src>

<mosaic_0001>
module attributes {stable_mosaic.version = 11 : i64} {
  func.func @_la_unigin_kernel(%arg0: memref<16x64xf32, #tpu.memory_space<vmem>>, %arg1: memref<8x16xbf16, #tpu.memory_space<vmem>>, %arg2: memref<16x8xbf16, #tpu.memory_space<vmem>>, %arg3: memref<8x1xf32, #tpu.memory_space<vmem>>, %arg4: memref<64x16xbf16, #tpu.memory_space<vmem>>, %arg5: memref<1x16xf32, #tpu.memory_space<vmem>>, %arg6: memref<16x128xbf16, #tpu.memory_space<vmem>>, %arg7: memref<1x128xf32, #tpu.memory_space<vmem>>, %arg8: memref<16x128xf32, #tpu.memory_space<vmem>>) attributes {dimension_semantics = [], scalar_prefetch = 0 : i64, scratch_operands = 0 : i64, tpu.core_type = #tpu.core_type<tc>} {
    %c0 = arith.constant 0 : index
    %c0_0 = arith.constant 0 : index
    %0 = vector.load %arg0[%c0, %c0_0] : memref<16x64xf32, #tpu.memory_space<vmem>>, vector<16x64xf32>
    %1 = arith.truncf %0 : vector<16x64xf32> to vector<16x64xbf16>
    %c0_1 = arith.constant 0 : index
    %c0_2 = arith.constant 0 : index
    %2 = vector.load %arg1[%c0_1, %c0_2] : memref<8x16xbf16, #tpu.memory_space<vmem>>, vector<8x16xbf16>
    %c0_3 = arith.constant 0 : index
    %c0_4 = arith.constant 0 : index
    %3 = vector.load %arg2[%c0_3, %c0_4] : memref<16x8xbf16, #tpu.memory_space<vmem>>, vector<16x8xbf16>
    %c0_5 = arith.constant 0 : index
    %c0_6 = arith.constant 0 : index
    %4 = vector.load %arg3[%c0_5, %c0_6] : memref<8x1xf32, #tpu.memory_space<vmem>>, vector<8x1xf32>
    %cst = arith.constant dense<0.000000e+00> : vector<8x64xf32>
    %5 = tpu.matmul %2, %1, %cst {dimension_numbers = #tpu.dot_dimension_numbers<[1], [0], [0], [1], [0, 0, 1, 1], [], []>} : vector<8x16xbf16>, vector<16x64xbf16>, vector<8x64xf32> -> vector<8x64xf32>
    %6 = vector.broadcast %4 : vector<8x1xf32> to vector<8x64xf32>
    %7 = arith.mulf %5, %6 : vector<8x64xf32>
    %cst_7 = arith.constant 1.000000e+00 : f32
    %8 = vector.broadcast %cst_7 : f32 to vector<16x64xf32>
    %9 = arith.mulf %8, %0 : vector<16x64xf32>
    %10 = arith.truncf %7 : vector<8x64xf32> to vector<8x64xbf16>
    %cst_8 = arith.constant dense<0.000000e+00> : vector<16x64xf32>
    %11 = tpu.matmul %3, %10, %cst_8 {dimension_numbers = #tpu.dot_dimension_numbers<[1], [0], [0], [1], [0, 0, 1, 1], [], []>} : vector<16x8xbf16>, vector<8x64xbf16>, vector<16x64xf32> -> vector<16x64xf32>
    %12 = arith.addf %9, %11 : vector<16x64xf32>
    %13 = arith.truncf %12 : vector<16x64xf32> to vector<16x64xbf16>
    %c0_9 = arith.constant 0 : index
    %c0_10 = arith.constant 0 : index
    %14 = vector.load %arg4[%c0_9, %c0_10] : memref<64x16xbf16, #tpu.memory_space<vmem>>, vector<64x16xbf16>
    %cst_11 = arith.constant dense<0.000000e+00> : vector<16x16xf32>
    %15 = tpu.matmul %13, %14, %cst_11 {dimension_numbers = #tpu.dot_dimension_numbers<[1], [0], [0], [1], [0, 0, 1, 1], [], []>} : vector<16x64xbf16>, vector<64x16xbf16>, vector<16x16xf32> -> vector<16x16xf32>
    %c0_12 = arith.constant 0 : index
    %c0_13 = arith.constant 0 : index
    %16 = vector.load %arg5[%c0_12, %c0_13] : memref<1x16xf32, #tpu.memory_space<vmem>>, vector<1x16xf32>
    %17 = vector.broadcast %16 : vector<1x16xf32> to vector<16x16xf32>
    %18 = arith.addf %15, %17 : vector<16x16xf32>
    %cst_14 = arith.constant 0.000000e+00 : f32
    %19 = vector.broadcast %cst_14 : f32 to vector<16x16xf32>
    %20 = arith.maximumf %18, %19 : vector<16x16xf32>
    %21 = arith.truncf %20 : vector<16x16xf32> to vector<16x16xbf16>
    %cst_15 = arith.constant dense<0.000000e+00> : vector<8x16xf32>
    %22 = tpu.matmul %2, %21, %cst_15 {dimension_numbers = #tpu.dot_dimension_numbers<[1], [0], [0], [1], [0, 0, 1, 1], [], []>} : vector<8x16xbf16>, vector<16x16xbf16>, vector<8x16xf32> -> vector<8x16xf32>
    %23 = vector.broadcast %4 : vector<8x1xf32> to vector<8x16xf32>
    %24 = arith.mulf %22, %23 : vector<8x16xf32>
    %cst_16 = arith.constant 1.000000e+00 : f32
    %25 = vector.broadcast %cst_16 : f32 to vector<16x16xf32>
    %26 = arith.mulf %25, %20 : vector<16x16xf32>
    %27 = arith.truncf %24 : vector<8x16xf32> to vector<8x16xbf16>
    %cst_17 = arith.constant dense<0.000000e+00> : vector<16x16xf32>
    %28 = tpu.matmul %3, %27, %cst_17 {dimension_numbers = #tpu.dot_dimension_numbers<[1], [0], [0], [1], [0, 0, 1, 1], [], []>} : vector<16x8xbf16>, vector<8x16xbf16>, vector<16x16xf32> -> vector<16x16xf32>
    %29 = arith.addf %26, %28 : vector<16x16xf32>
    %30 = arith.truncf %29 : vector<16x16xf32> to vector<16x16xbf16>
    %c0_18 = arith.constant 0 : index
    %c0_19 = arith.constant 0 : index
    %31 = vector.load %arg6[%c0_18, %c0_19] : memref<16x128xbf16, #tpu.memory_space<vmem>>, vector<16x128xbf16>
    %cst_20 = arith.constant dense<0.000000e+00> : vector<16x128xf32>
    %32 = tpu.matmul %30, %31, %cst_20 {dimension_numbers = #tpu.dot_dimension_numbers<[1], [0], [0], [1], [0, 0, 1, 1], [], []>} : vector<16x16xbf16>, vector<16x128xbf16>, vector<16x128xf32> -> vector<16x128xf32>
    %c0_21 = arith.constant 0 : index
    %c0_22 = arith.constant 0 : index
    %33 = vector.load %arg7[%c0_21, %c0_22] : memref<1x128xf32, #tpu.memory_space<vmem>>, vector<1x128xf32>
    %34 = vector.broadcast %33 : vector<1x128xf32> to vector<16x128xf32>
    %35 = arith.addf %32, %34 : vector<16x128xf32>
    %c0_23 = arith.constant 0 : index
    %c0_24 = arith.constant 0 : index
    %36 = vector.load %arg8[%c0_23, %c0_24] : memref<16x128xf32, #tpu.memory_space<vmem>>, vector<16x128xf32>
    tpu.vector_store %arg8[%c0_23, %c0_24], %35 {strides = array<i32>} : memref<16x128xf32, #tpu.memory_space<vmem>>, vector<16x128xf32>,
    return
  }
}

</mosaic_0001>

<bundles_post_ra>
// kernel: tpu_custom_call.1
= control target key start
LH: loop header
LB: loop body
LE: loop exit
PB: predicated region body
PF: predicated region fallthrough
CT: control target
= control target key end

     0   :  { %v507_v2 = vmov 0.0   ;;  %vm508_vm0 = vmmov 0   ;;  %vm38_vm1 = vcmask 130048   ;;  %v509_v6 = vmov 0   ;;  %s634_s0 = inlined_call_operand.vmem [shape: f32[16,64], index: 0, kind: input, shape index: {}]   ;;  %s635_s1 = inlined_call_operand.vmem [shape: bf16[8,16], index: 1, kind: input, shape index: {}]   ;;  %s636_s2 = inlined_call_operand.vmem [shape: bf16[16,8], index: 2, kind: input, shape index: {}]   ;;  %s637_s3 = inlined_call_operand.vmem [shape: f32[8,1], index: 3, kind: input, shape index: {}]   ;;  %s638_s4 = inlined_call_operand.vmem [shape: bf16[64,16], index: 4, kind: input, shape index: {}]   ;;  %s639_s5 = inlined_call_operand.vmem [shape: f32[1,16], index: 5, kind: input, shape index: {}]   ;;  %s640_s6 = inlined_call_operand.vmem [shape: bf16[16,128], index: 6, kind: input, shape index: {}]   ;;  %s641_s7 = inlined_call_operand.vmem [shape: f32[1,128], index: 7, kind: input, shape index: {}]   ;;  %s642_s8 = inlined_call_operand.hbm [shape: f32[16,128], index: 8, kind: output, shape index: {}]  }
   0x1   :  { %v31_v0 = vld [vmem:[%s634_s0] sm:$0xff]  ;;  %v32_v1 = vld [vmem:[%s634_s0 + $0x8] sm:$0xff]  ;;  %428 = vmatprep.subr.bf16.mxu0 %v507_v2  ;;  %430 = vmatprep.mubr.msk.bf16.mxu0 %vm508_vm0, %v507_v2 }
   0x2   :  { %v33_v3 = vpack.c.bf16 %v32_v1, %v31_v0  ;;  %v34_v4 = vld [vmem:[%s635_s1] sm:$0xf]  ;;  %476 = vset.pattern.permute.xlu0 %v509_v6  ;;  %434 = vmatprep.subr.bf16.mxu1 %v507_v2 }
   0x3   :  { %v37_v5 = vld [vmem:[%s637_s3] sm:$0xff]  ;;  %436 = vmatprep.mubr.msk.bf16.mxu1 %vm508_vm0, %v507_v2 }
   0x4   :  { %429 = vmatpush3.bf16.msra.mxu0 %v33_v3  ;;  %84 = vperm.xlu0 %476, %v37_v5  }
   0x5   :  { %440 = vmatprep.subr.bf16.mxu0 %v507_v2 }
   0x6   :  { %13 = vsyncpa [#allocation3], 0  ;;  %v478_v7 = vld [vmem:[%s638_s4] sm:$0xff]   ;;  %v479_v8 = vld [vmem:[%s638_s4 + $0x8] sm:$0xff]   ;;  %vm98_vm2 = vcmask 1043456   ;;  %vm94_vm3 = vcmask 64512  }
   0x7   :  { %431 = vmatmul.mubr.msk.bf16.vlgmr.msra.gmra.mrb[0].mxu0 %vm38_vm1, %v34_v4  ;;  %v477_v17 = vld [vmem:[%s636_s2] sm:$0xff]   ;;  %v480_v18 = vld [vmem:[%s638_s4 + $0x10] sm:$0xff]   ;;  %v481_v19 = vld [vmem:[%s638_s4 + $0x18] sm:$0xff]   ;;  %vm185_vm4 = vcmask 523264   ;;  %s510_s23 = smov [#allocation2]  }
   0x8   :  { %448 = vmatprep.mubr.msk.bf16.mxu0 %vm508_vm0, %v507_v2  ;;  %441 = vmatpush3.bf16.msra.mxu0 %v478_v7  ;;  %v402_v27 = vld [vmem:[%s639_s5] ss:$0 sm:$0xff]  ;;  %s388_s24 = sshll.u32 %s510_s23, 4  ;;  %s389_s24 = int_to_ptr.vmem [resolvable:$true] %s388_s24 }
   0x9   :  { %442 = vmatprep.subr.bf16.mxu0 %v507_v2  ;;  %v482_v44 = vld [vmem:[%s640_s6] sm:$0xff]   ;;  %s483_s6 = scalar_lea.vmem %s389_s24, 256  ;;  %p488_p1 = scmp.lt.s32.totalorder %s389_s24, %s389_s24 }
   0xa   :  { %v410_v52 = vld [vmem:[%s641_s7] ss:$0 sm:$0xff]  ;;  %p484_p0 = scmp.ne.s32.totalorder %s389_s24, %s483_s6  ;;  %p489_p2 = scmp.lt.s32.totalorder %s483_s6, %s483_s6 }
   0xc   :  { %443 = vmatpush3.bf16.msra.mxu0 %v479_v8  ;;  %p490_p3 = por %p489_p2, %p488_p1 }
   0xd   :  { %444 = vmatprep.subr.bf16.mxu0 %v507_v2 }
   0xe   :  { %p491_p4 = pnand %p490_p3, %p484_p0 }
  0x10   :  { %445 = vmatpush3.bf16.msra.mxu0 %v480_v18 }
  0x11   :  { %446 = vmatprep.subr.bf16.mxu0 %v507_v2 }
  0x14   :  { %447 = vmatpush3.bf16.msra.mxu0 %v481_v19 }
  0x15   :  { %464 = vmatprep.subr.bf16.mxu0 %v507_v2 }
  0x83   :  { %v85_v9 = vpop.permute.xlu0 %84 }
  0xda   :  { %v76_v10 = vpop.f32.mrb[0].mxu0 }
  0xdb   :  { %v87_v11 = vmul.f32 %v85_v9, %v76_v10  ;;  %v432_v12 = vpop.f32.mrb[1].mxu0 }
  0xdc   :  { %v79_v13 = vpop.f32.mrb[2].mxu0 }
  0xdd   :  { %v88_v14 = vpack.c.bf16 %v87_v11, %v87_v11  ;;  %v433_v15 = vpop.f32.mrb[3].mxu0 }
  0xdf   :  { %v100_v16 = vsel %vm98_vm2, %v88_v14, 0 }
  0xe0   :  { %435 = vmatpush3.bf16.msra.mxu1 %v100_v16 }
  0xe1   :  { %452 = vmatprep.subr.bf16.mxu1 %v507_v2 }
  0xe3   :  { %437 = vmatmul.mubr.msk.bf16.vlgmr.msra.gmra.mrb[0].mxu1 %vm94_vm3, %v477_v17 }
  0xe4   :  { %454 = vmatprep.mubr.msk.bf16.mxu1 %vm508_vm0, %v507_v2 }
 0x1b6   :  { %v136_v20 = vpop.f32.mrb[0].mxu1 }
 0x1b7   :  { %v438_v21 = vpop.f32.mrb[1].mxu1  ;;  %v143_v23 = vadd.f32 %v136_v20, %v31_v0 }
 0x1b8   :  { %v139_v22 = vpop.f32.mrb[2].mxu1 }
 0x1b9   :  { %v144_v24 = vadd.f32 %v139_v22, %v32_v1  ;;  %v439_v25 = vpop.f32.mrb[3].mxu1 }
 0x1bb   :  { %v145_v26 = vpack.c.bf16 %v144_v24, %v143_v23 }
 0x1bd   :  { %449 = vmatmul.mubr.msk.bf16.vlgmr.msra.gmra.mrb[4].mxu0 %vm185_vm4, %v145_v26 }
 0x1be   :  { %466 = vmatprep.mubr.msk.bf16.mxu0 %vm508_vm0, %v507_v2  ;;  %465 = vmatpush3.bf16.msra.mxu0 %v482_v44 }
 0x290   :  { %v223_v28 = vpop.f32.mrb[4].mxu0 }
 0x291   :  { %v224_v29 = vadd.f32 %v402_v27, %v223_v28  ;;  %v450_v30 = vpop.f32.mrb[5].mxu0 }
 0x292   :  { %v226_v31 = vpop.f32.mrb[6].mxu0 }
 0x293   :  { %v227_v32 = vadd.f32 %v402_v27, %v226_v31  ;;  %v451_v33 = vpop.f32.mrb[7].mxu0  ;;  %v230_v34 = vmax.f32 %v224_v29, 0.0 }
 0x295   :  { %v231_v35 = vmax.f32 %v227_v32, 0.0 }
 0x297   :  { %v232_v36 = vpack.c.bf16 %v231_v35, %v230_v34 }
 0x299   :  { %453 = vmatpush3.bf16.msra.mxu1 %v232_v36 }
 0x29a   :  { %458 = vmatprep.subr.bf16.mxu1 %v507_v2 }
 0x29c   :  { %455 = vmatmul.mubr.msk.bf16.vlgmr.msra.gmra.mrb[4].mxu1 %vm38_vm1, %v34_v4 }
 0x29d   :  { %460 = vmatprep.mubr.msk.bf16.mxu1 %vm508_vm0, %v507_v2 }
 0x36f   :  { %v267_v37 = vpop.f32.mrb[4].mxu1 }
 0x370   :  { %v273_v38 = vmul.f32 %v267_v37, %v85_v9  ;;  %v456_v39 = vpop.f32.mrb[5].mxu1 }
 0x371   :  { %v270_v40 = vpop.f32.mrb[6].mxu1 }
 0x372   :  { %v274_v41 = vpack.c.bf16 %v273_v38, %v273_v38  ;;  %v457_v42 = vpop.f32.mrb[7].mxu1 }
 0x374   :  { %v276_v43 = vsel %vm98_vm2, %v274_v41, 0 }
 0x375   :  { %459 = vmatpush3.bf16.msra.mxu1 %v276_v43 }
 0x378   :  { %461 = vmatmul.mubr.msk.bf16.vlgmr.msra.gmra.mrb[8].mxu1 %vm94_vm3, %v477_v17 }
 0x44b   :  { %v312_v45 = vpop.f32.mrb[8].mxu1 }
 0x44c   :  { %v462_v46 = vpop.f32.mrb[9].mxu1  ;;  %v319_v48 = vadd.f32 %v312_v45, %v230_v34 }
 0x44d   :  { %v315_v47 = vpop.f32.mrb[10].mxu1 }
 0x44e   :  { %v320_v49 = vadd.f32 %v315_v47, %v231_v35  ;;  %v463_v50 = vpop.f32.mrb[11].mxu1 }
 0x450   :  { %v321_v51 = vpack.c.bf16 %v320_v49, %v319_v48 }
 0x452   :  { %467 = vmatmul.mubr.msk.bf16.vlgmr.msra.gmra.mrb[8].mxu0 %vm38_vm1, %v321_v51 }
 0x525   :  { %v374_v53 = vpop.f32.mrb[8].mxu0 }
 0x526   :  { %v375_v54 = vadd.f32 %v410_v52, %v374_v53  ;;  %v468_v55 = vpop.f32.mrb[9].mxu0 }
 0x527   :  { %v377_v56 = vpop.f32.mrb[10].mxu0 }
 0x528   :  { %381 = vst [vmem:[#allocation2] sm:$0xff] %v375_v54  ;;  %v378_v57 = vadd.f32 %v410_v52, %v377_v56  ;;  %v469_v58 = vpop.f32.mrb[11].mxu0 }
 0x52a   :  { %382 = vst [vmem:[#allocation2 + $0x8] sm:$0xff] %v378_v57 }
 0x52b   :  { %494 = shalt.err (!%p491_p4)
}
 0x52c   :  { %s495_s26 = scalar_lea.hbm %s642_s8, 256 }
 0x52d   :  { %p496_p5 = scmp.ne.s32.totalorder %s642_s8, %s495_s26  ;;  %p499_p6 = scmp.lt.u32.totalorder %s495_s26, %s642_s8 }
 0x52f   :  { %p501_p7 = pnand %p499_p6, %p496_p5 }
 0x531   :  { %504 = shalt.err (!%p501_p7)
}
 0x532   :  { %s511_s9 = smov 128   ;;  %s512_s10 = smov 8  }
 0x533   :  { %394 = dma.vmem_to_hbm [thread:$0]  %s389_s24, 256, %s642_s8, [#allocation3], %s511_s9, %s511_s9, %s512_s10  }
 0x534   :  { %505 = dma.done.wait [#allocation3], 256  }
 0x535   :  { %506 = vsyncadd [#allocation3], 4294967040 }
 0x536   :  { %398 = vsyncpa [#allocation3], 1 }

</bundles_post_ra>
